<compile_context>
chip_gen: v7x
topology: tpu7x:2x2x1
jax: 0.10.0
libtpu: 0.0.40
codegen_flags: <defaults>
</compile_context>

<pallas_src>
import jax
import jax.numpy as jnp
from jax.experimental import pallas as pl
from jax.experimental.pallas import tpu as pltpu


def _round_up(n, m):
    return ((n + m - 1) // m) * m


def res_layer_kernel(x_ref, w1_ref, b1_ref, w2_ref, b2_ref, o_ref):
    x = x_ref[...]                                            # f32 [tm, H]
    # first linear: bf16 MXU inputs, f32 accumulation; bias + ReLU in f32
    y = jnp.dot(x.astype(w1_ref.dtype), w1_ref[...],
                preferred_element_type=jnp.float32)           # [tm, Hp]
    y = jnp.maximum(y + b1_ref[...], 0.0)
    # TODO(synk): nn.Dropout() is identity in eval mode; training-mode dropout
    # (p=0.5 with 1/(1-p) scaling) would use pltpu.prng_seed/prng_random_bits.
    # second linear + bias + ReLU, back at the true width H
    y = jnp.dot(y.astype(w2_ref.dtype), w2_ref[...],
                preferred_element_type=jnp.float32)           # [tm, H]
    y = jnp.maximum(y + b2_ref[...], 0.0)
    # residual add in f32
    o_ref[...] = (x + y).astype(o_ref.dtype)


def prepare_res_layer_params(w1, b1, w2, b2, *, matmul_dtype=jnp.bfloat16):
    """One-time weight prep (do at load time, not per call): transpose from the
    PyTorch [out, in] layout to [in, out], pad only the VMEM-resident hidden
    dimension up to a multiple of 128, and cast matmul operands to bf16.
    Zero-padded W1^T columns stay exactly 0 through bias/ReLU and zero-padded
    W2^T rows contribute nothing, so the math matches the unpadded layer."""
    H = int(w1.shape[0])
    Hp = _round_up(max(H, 128), 128)
    pad = Hp - H
    w1_t = jnp.pad(jnp.asarray(w1).T, ((0, 0), (0, pad))).astype(matmul_dtype)  # [H, Hp]
    w2_t = jnp.pad(jnp.asarray(w2).T, ((0, pad), (0, 0))).astype(matmul_dtype)  # [Hp, H]
    b1_p = jnp.pad(jnp.asarray(b1, jnp.float32), (0, pad)).reshape(1, Hp)       # [1, Hp]
    b2_p = jnp.asarray(b2, jnp.float32).reshape(1, H)                           # [1, H]
    return dict(w1_t=w1_t, b1=b1_p, w2_t=w2_t, b2=b2_p, h=H, h_padded=Hp)


def _vmem_capacity_bytes():
    # Per-generation capacity (v7x: 64 MiB/TC, v5e/v6e: 128 MiB).  Narrow
    # capability query only; fall back to the smallest generation.
    try:
        return int(pltpu.get_tpu_info().vmem_capacity_bytes)
    except Exception:
        return 64 * 1024 * 1024


def _vmem_budget_bytes(tm, H, Hp, w_itemsize):
    return (2 * (H * Hp + Hp * H) * w_itemsize     # W1^T, W2^T (double-buffered)
            + 2 * (Hp + H) * 4                     # biases (f32, double-buffered)
            + 2 * 2 * tm * H * 4                   # x / out tiles, double-buffered
            + 2 * tm * Hp * 4)                     # f32 intermediates + headroom


def _pallas_res_layer(x, params, tm, vmem_limit):
    B, H = x.shape
    Hp = params["h_padded"]
    grid = (pl.cdiv(B, tm),)   # partial last block is masked by Pallas

    return pl.pallas_call(
        res_layer_kernel,
        out_shape=jax.ShapeDtypeStruct((B, H), x.dtype),
        grid_spec=pltpu.PrefetchScalarGridSpec(
            num_scalar_prefetch=0,
            grid=grid,
            in_specs=[
                pl.BlockSpec((tm, H), lambda i: (i, 0)),     # x tile, true width
                pl.BlockSpec((H, Hp), lambda i: (0, 0)),     # W1^T (grid-invariant)
                pl.BlockSpec((1, Hp), lambda i: (0, 0)),     # b1
                pl.BlockSpec((Hp, H), lambda i: (0, 0)),     # W2^T (grid-invariant)
                pl.BlockSpec((1, H), lambda i: (0, 0)),      # b2
            ],
            out_specs=pl.BlockSpec((tm, H), lambda i: (i, 0)),  # true width
        ),
        compiler_params=pltpu.CompilerParams(
            dimension_semantics=("parallel",),
            vmem_limit_bytes=vmem_limit,
        ),
    )(x, params["w1_t"], params["b1"], params["w2_t"], params["b2"])


def res_layer(x, params, *, tm=1024):
    """Apply ResLayer. x: [B, H] float32; params from prepare_res_layer_params."""
    B, H = x.shape
    assert H == params["h"], "feature width must match prepared params"
    Hp = params["h_padded"]
    x = x.astype(jnp.float32)

    # Batch tile: multiple of 8, capped by the batch; keep at least 2 parallel
    # grid steps when the batch allows so both v7x TensorCores get work.
    tm_eff = min(_round_up(tm, 8), _round_up(B, 8))
    if B >= 16:
        tm_eff = min(tm_eff, _round_up(pl.cdiv(B, 2), 8))
    tm_eff = max(tm_eff, 8)

    # VMEM-aware back-off for large Hp (v7x has half the VMEM of v5e/v6e).
    w_item = jnp.dtype(params["w1_t"].dtype).itemsize
    vmem_cap = _vmem_capacity_bytes()
    while tm_eff > 8 and _vmem_budget_bytes(tm_eff, H, Hp, w_item) > int(0.7 * vmem_cap):
        tm_eff = max(8, _round_up(tm_eff // 2, 8))

    budget = _vmem_budget_bytes(tm_eff, H, Hp, w_item)
    vmem_limit = int(min(max(2 * budget, 32 * 1024 * 1024), int(0.9 * vmem_cap)))

    return _pallas_res_layer(x, params, tm_eff, vmem_limit)


def res_layer_ref(x, w1, b1, w2, b2):
    """Pure-JAX reference matching the PyTorch forward (eval-mode dropout)."""
    y = jnp.maximum(x @ w1.T + b1, 0.0)
    y = jnp.maximum(y @ w2.T + b2, 0.0)
    return x + y


if __name__ == "__main__":
    key = jax.random.PRNGKey(0)
    B, H = 512, 32  # batch, linear_size (only VMEM-side operands get lane-padded)

    k_x, k_w1, k_b1, k_w2, k_b2 = jax.random.split(key, 5)
    # Deterministic synthetic parameters (PyTorch-Linear-like uniform init).
    bound = 1.0 / (H ** 0.5)
    x = jax.random.normal(k_x, (B, H), dtype=jnp.float32)
    w1 = jax.random.uniform(k_w1, (H, H), jnp.float32, -bound, bound)
    b1 = jax.random.uniform(k_b1, (H,), jnp.float32, -bound, bound)
    w2 = jax.random.uniform(k_w2, (H, H), jnp.float32, -bound, bound)
    b2 = jax.random.uniform(k_b2, (H,), jnp.float32, -bound, bound)

    params = prepare_res_layer_params(w1, b1, w2, b2)  # one-time weight prep

    # Even batch: 2 full parallel grid steps.
    out = jax.block_until_ready(res_layer(x, params))
    ref = res_layer_ref(x, w1, b1, w2, b2)
    assert out.shape == (B, H)
    # bf16 MXU inputs (f32 accumulation) -> slightly loosened tolerance vs f32 ref.
    max_err = jnp.max(jnp.abs(out - ref))
    assert jnp.allclose(out, ref, atol=5e-2, rtol=5e-2), f"mismatch, max abs err={max_err}"

    # Ragged batch: exercises the masked partial last block (no batch padding).
    B2 = 200
    x2 = x[:B2]
    out2 = jax.block_until_ready(res_layer(x2, params))
    ref2 = res_layer_ref(x2, w1, b1, w2, b2)
    assert out2.shape == (B2, H)
    max_err2 = jnp.max(jnp.abs(out2 - ref2))
    assert jnp.allclose(out2, ref2, atol=5e-2, rtol=5e-2), f"ragged mismatch, max abs err={max_err2}"

    print("KERNEL_OK")
</pallas_src>

<mosaic_0001>
module attributes {stable_mosaic.version = 11 : i64} {
  func.func @res_layer_kernel(%arg0: i32, %arg1: memref<256x32xf32, #tpu.memory_space<vmem>>, %arg2: memref<32x128xbf16, #tpu.memory_space<vmem>>, %arg3: memref<1x128xf32, #tpu.memory_space<vmem>>, %arg4: memref<128x32xbf16, #tpu.memory_space<vmem>>, %arg5: memref<1x32xf32, #tpu.memory_space<vmem>>, %arg6: memref<256x32xf32, #tpu.memory_space<vmem>>) attributes {dimension_semantics = [#tpu.dimension_semantics<parallel>], iteration_bounds = array<i64: 2>, scalar_prefetch = 0 : i64, scratch_operands = 0 : i64, tpu.core_type = #tpu.core_type<tc>, window_params = [{transform_indices = @transform_0, window_bounds = array<i64: 256, 32>}, {pipeline_mode = #tpu.pipeline_mode<synchronous>, transform_indices = @transform_1, window_bounds = array<i64: 32, 128>}, {pipeline_mode = #tpu.pipeline_mode<synchronous>, transform_indices = @transform_2, window_bounds = array<i64: 1, 128>}, {pipeline_mode = #tpu.pipeline_mode<synchronous>, transform_indices = @transform_3, window_bounds = array<i64: 128, 32>}, {pipeline_mode = #tpu.pipeline_mode<synchronous>, transform_indices = @transform_4, window_bounds = array<i64: 1, 32>}, {transform_indices = @transform_5, window_bounds = array<i64: 256, 32>}]} {
    %c0 = arith.constant 0 : index
    %c0_0 = arith.constant 0 : index
    %0 = vector.load %arg1[%c0, %c0_0] : memref<256x32xf32, #tpu.memory_space<vmem>>, vector<256x32xf32>
    %1 = arith.truncf %0 : vector<256x32xf32> to vector<256x32xbf16>
    %c0_1 = arith.constant 0 : index
    %c0_2 = arith.constant 0 : index
    %2 = vector.load %arg2[%c0_1, %c0_2] : memref<32x128xbf16, #tpu.memory_space<vmem>>, vector<32x128xbf16>
    %cst = arith.constant dense<0.000000e+00> : vector<256x128xf32>
    %3 = tpu.matmul %1, %2, %cst {dimension_numbers = #tpu.dot_dimension_numbers<[1], [0], [0], [1], [0, 0, 1, 1], [], []>} : vector<256x32xbf16>, vector<32x128xbf16>, vector<256x128xf32> -> vector<256x128xf32>
    %c0_3 = arith.constant 0 : index
    %c0_4 = arith.constant 0 : index
    %4 = vector.load %arg3[%c0_3, %c0_4] : memref<1x128xf32, #tpu.memory_space<vmem>>, vector<1x128xf32>
    %5 = vector.broadcast %4 : vector<1x128xf32> to vector<256x128xf32>
    %6 = arith.addf %3, %5 : vector<256x128xf32>
    %cst_5 = arith.constant 0.000000e+00 : f32
    %7 = vector.broadcast %cst_5 : f32 to vector<256x128xf32>
    %8 = arith.maximumf %6, %7 : vector<256x128xf32>
    %9 = arith.truncf %8 : vector<256x128xf32> to vector<256x128xbf16>
    %c0_6 = arith.constant 0 : index
    %c0_7 = arith.constant 0 : index
    %10 = vector.load %arg4[%c0_6, %c0_7] : memref<128x32xbf16, #tpu.memory_space<vmem>>, vector<128x32xbf16>
    %cst_8 = arith.constant dense<0.000000e+00> : vector<256x32xf32>
    %11 = tpu.matmul %9, %10, %cst_8 {dimension_numbers = #tpu.dot_dimension_numbers<[1], [0], [0], [1], [0, 0, 1, 1], [], []>} : vector<256x128xbf16>, vector<128x32xbf16>, vector<256x32xf32> -> vector<256x32xf32>
    %c0_9 = arith.constant 0 : index
    %c0_10 = arith.constant 0 : index
    %12 = vector.load %arg5[%c0_9, %c0_10] : memref<1x32xf32, #tpu.memory_space<vmem>>, vector<1x32xf32>
    %13 = vector.broadcast %12 : vector<1x32xf32> to vector<256x32xf32>
    %14 = arith.addf %11, %13 : vector<256x32xf32>
    %cst_11 = arith.constant 0.000000e+00 : f32
    %15 = vector.broadcast %cst_11 : f32 to vector<256x32xf32>
    %16 = arith.maximumf %14, %15 : vector<256x32xf32>
    %17 = arith.addf %0, %16 : vector<256x32xf32>
    %c0_12 = arith.constant 0 : index
    %c0_13 = arith.constant 0 : index
    %18 = vector.load %arg6[%c0_12, %c0_13] : memref<256x32xf32, #tpu.memory_space<vmem>>, vector<256x32xf32>
    tpu.vector_store %arg6[%c0_12, %c0_13], %17 {strides = array<i32>} : memref<256x32xf32, #tpu.memory_space<vmem>>, vector<256x32xf32>,
    return
  }
  func.func @transform_0(%arg0: i32) -> (i32, i32) {
    %c0_i32 = arith.constant 0 : i32
    %c0_i32_0 = arith.constant 0 : i32
    return %arg0, %c0_i32 : i32, i32
  }
  func.func @transform_1(%arg0: i32) -> (i32, i32) {
    %c0_i32 = arith.constant 0 : i32
    %c0_i32_0 = arith.constant 0 : i32
    %c0_i32_1 = arith.constant 0 : i32
    return %c0_i32, %c0_i32_0 : i32, i32
  }
  func.func @transform_2(%arg0: i32) -> (i32, i32) {
    %c0_i32 = arith.constant 0 : i32
    %c0_i32_0 = arith.constant 0 : i32
    %c0_i32_1 = arith.constant 0 : i32
    return %c0_i32, %c0_i32_0 : i32, i32
  }
  func.func @transform_3(%arg0: i32) -> (i32, i32) {
    %c0_i32 = arith.constant 0 : i32
    %c0_i32_0 = arith.constant 0 : i32
    %c0_i32_1 = arith.constant 0 : i32
    return %c0_i32, %c0_i32_0 : i32, i32
  }
  func.func @transform_4(%arg0: i32) -> (i32, i32) {
    %c0_i32 = arith.constant 0 : i32
    %c0_i32_0 = arith.constant 0 : i32
    %c0_i32_1 = arith.constant 0 : i32
    return %c0_i32, %c0_i32_0 : i32, i32
  }
  func.func @transform_5(%arg0: i32) -> (i32, i32) {
    %c0_i32 = arith.constant 0 : i32
    %c0_i32_0 = arith.constant 0 : i32
    return %arg0, %c0_i32 : i32, i32
  }
}

</mosaic_0001>

<bundles_post_ra>
// kernel: tpu_custom_call.1
= control target key start
LH: loop header
LB: loop body
LE: loop exit
PB: predicated region body
PF: predicated region fallthrough
CT: control target
= control target key end

     0   :  { %s1179_s18 = smov 0   ;;  %s1551_s0 = inlined_call_operand.vmem [shape: f32[512,32], index: 0, kind: input, shape index: {}]   ;;  %s1552_s1 = inlined_call_operand.vmem [shape: bf16[32,128], index: 1, kind: input, shape index: {}]   ;;  %s1553_s2 = inlined_call_operand.vmem [shape: f32[1,128], index: 2, kind: input, shape index: {}]   ;;  %s1554_s3 = inlined_call_operand.vmem [shape: bf16[128,32], index: 3, kind: input, shape index: {}]   ;;  %s1555_s4 = inlined_call_operand.vmem [shape: f32[1,32], index: 4, kind: input, shape index: {}]   ;;  %s1556_s5 = inlined_call_operand.vmem [shape: f32[512,32], index: 5, kind: output, shape index: {}]  }
   0x1 LB: > { %s942_s19 = sadd.s32 4294967295, %s1147_s18   ;;  %p946_p0 = scmp.ge.s32.totalorder %s1147_s18, 1  ;;  %s1147_s18 = sphi %s1179_s18, %s15_s18  }
   0x2   : > { %p188_p1 = scmp.lt.s32.totalorder %s1147_s18, 3 }
   0x4   : > { %p189_p2 = pnand %p946_p0, %p188_p1 }
   0x5   : > { %v1131_v0 = vld [vmem:[%s1552_s1] sm:$0xff] (!%p189_p2)   ;;  %s947_s22 = sshll.u32 (!%p189_p2), %s942_s19, 5  ;;  %v1132_v1 = vld [vmem:[%s1552_s1 + $0x8] sm:$0xff] (!%p189_p2)   ;;  %v1135_v4 = vld [vmem:[%s1554_s3 + $0x10] sm:$0xff] (!%p189_p2)   ;;  %vm300_vm0 = vcmask (!%p189_p2), 261120  }
   0x6   : > { %192 = sbr.rel (%p189_p2) target bundleno = 520 (0x208), region = 40  ;;  %p217_p3 = scmp.lt.s32.totalorder (!%p189_p2), %s947_s22, 63  ;;  %1023 = vmatprep.subr.bf16.mxu0 (!%p189_p2), %v1131_v0  ;;  %v1133_v2 = vld [vmem:[%s1554_s3] sm:$0xff] (!%p189_p2)   ;;  %v1134_v3 = vld [vmem:[%s1554_s3 + $0x8] sm:$0xff] (!%p189_p2)   ;;  %v1136_v16 = vld [vmem:[%s1554_s3 + $0x18] sm:$0xff] (!%p189_p2)  }
   0x7   : > { %1024 = vmatpush3.bf16.msra.mxu0 (!%p189_p2), %v1131_v0  ;;  %1107 = vmatprep.subr.bf16.mxu1 (!%p189_p2), %v1133_v2  ;;  %v1137_v21 = vld [vmem:[%s1554_s3 + $0x20] sm:$0xff] (!%p189_p2)   ;;  %v1138_v24 = vld [vmem:[%s1554_s3 + $0x28] sm:$0xff] (!%p189_p2)   ;;  %v1139_v56 = vld [vmem:[%s1554_s3 + $0x30] sm:$0xff] (!%p189_p2)  }
   0x8   : > { %1025 = vmatprep.subr.bf16.mxu0 (!%p189_p2), %v1132_v1  ;;  %1115 = vmatpush3.bf16.msra.mxu1 (!%p189_p2), %v1133_v2  ;;  %v1140_v57 = vld [vmem:[%s1554_s3 + $0x38] sm:$0xff] (!%p189_p2)   ;;  %v1374_v58 = vld [vmem:[%s1553_s2] ss:$0 sm:$0xff] (!%p189_p2) }
   0x9   : > { %1108 = vmatprep.subr.bf16.mxu1 (!%p189_p2), %v1134_v3 }
   0xb   : > { %1026 = vmatpush3.bf16.msra.mxu0 (!%p189_p2), %v1132_v1 }
   0xc   : > { %1059 = vmatprep.subr.bf16.mxu0 (!%p189_p2), %v1133_v2  ;;  %1116 = vmatpush3.bf16.msra.mxu1 (!%p189_p2), %v1134_v3 }
   0xd   : > { %s1558_s22 = smov (!%p217_p3, %s947_s22), 63  ;;  %1109 = vmatprep.subr.bf16.mxu1 %v1135_v4 }
   0xe   : > { %s948_s29 = sshll.u32 %s1558_s22, 3 }
   0xf   : > { %s1207_s7 = scalar_lea.vmem %s1551_s0, %s948_s29  ;;  %s1421_s28 = scalar_lea.vmem %s1556_s5, %s948_s29 }
  0x10   : > { %v1213_v5 = vld [vmem:[%s1207_s7] sm:$0xff]  ;;  %v1216_v6 = vld [vmem:[%s1207_s7 + $0x8] sm:$0xff]  ;;  %v1219_v7 = vld [vmem:[%s1207_s7 + $0x10] sm:$0xff]  ;;  %1117 = vmatpush3.bf16.msra.mxu1 %v1135_v4 }
  0x11   : > { %v261_v8 = vpack.c.bf16 %v1216_v6, %v1213_v5  ;;  %v1224_v9 = vld [vmem:[%s1207_s7 + $0x18] sm:$0xff]  ;;  %v1227_v10 = vld [vmem:[%s1207_s7 + $0x20] sm:$0xff]  ;;  %v1230_v11 = vld [vmem:[%s1207_s7 + $0x28] sm:$0xff]  ;;  %1110 = vmatprep.subr.bf16.mxu1 %v1136_v16 }
  0x12   : > { %v262_v12 = vpack.c.bf16 %v1224_v9, %v1219_v7  ;;  %v263_v13 = vpack.c.bf16 %v1230_v11, %v1227_v10  ;;  %v1240_v14 = vld [vmem:[%s1207_s7 + $0x30] sm:$0xff]  ;;  %v1243_v15 = vld [vmem:[%s1207_s7 + $0x38] sm:$0xff]  ;;  %v1249_v17 = vld [vmem:[%s1207_s7 + $0x40] sm:$0xff] }
  0x13   : > { %1027 = vmatprep.mubr.msk.bf16.mxu0 %vm300_vm0, %v261_v8  ;;  %v1252_v18 = vld [vmem:[%s1207_s7 + $0x48] sm:$0xff]  ;;  %v264_v19 = vpack.c.bf16 %v1243_v15, %v1240_v14  ;;  %v1264_v22 = vld [vmem:[%s1207_s7 + $0x50] sm:$0xff]  ;;  %v1267_v23 = vld [vmem:[%s1207_s7 + $0x58] sm:$0xff] }
  0x14   : > { %1028 = vmatmul.mubr.msk.bf16.vlgmr.msra.gmra.mrb[0].mxu0 %vm300_vm0, %v262_v12  ;;  %v265_v20 = vpack.c.bf16 %v1252_v18, %v1249_v17  ;;  %1118 = vmatpush3.bf16.msra.mxu1 %v1136_v16  ;;  %v1273_v25 = vld [vmem:[%s1207_s7 + $0x60] sm:$0xff]  ;;  %v1276_v26 = vld [vmem:[%s1207_s7 + $0x68] sm:$0xff]  ;;  %v266_v27 = vpack.c.bf16 %v1267_v23, %v1264_v22  ;;  %v1285_v29 = vld [vmem:[%s1207_s7 + $0x70] sm:$0xff] }
  0x15   : > { %1031 = vmatprep.mubr.msk.bf16.mxu0 %vm300_vm0, %v263_v13  ;;  %1060 = vmatpush3.bf16.msra.mxu0 %v1133_v2  ;;  %v267_v28 = vpack.c.bf16 %v1276_v26, %v1273_v25  ;;  %v1288_v30 = vld [vmem:[%s1207_s7 + $0x78] sm:$0xff]  ;;  %v1291_v31 = vld [vmem:[%s1207_s7 + $0x80] sm:$0xff]  ;;  %v1294_v32 = vld [vmem:[%s1207_s7 + $0x88] sm:$0xff] }
  0x16   : > { %1061 = vmatprep.subr.bf16.mxu0 %v1134_v3  ;;  %1111 = vmatprep.subr.bf16.mxu1 %v1137_v21  ;;  %v268_v33 = vpack.c.bf16 %v1288_v30, %v1285_v29  ;;  %v269_v34 = vpack.c.bf16 %v1294_v32, %v1291_v31  ;;  %v1303_v35 = vld [vmem:[%s1207_s7 + $0x90] sm:$0xff]  ;;  %v1306_v36 = vld [vmem:[%s1207_s7 + $0x98] sm:$0xff]  ;;  %v1309_v37 = vld [vmem:[%s1207_s7 + $0xa0] sm:$0xff] }
  0x17   : > { %v1312_v38 = vld [vmem:[%s1207_s7 + $0xa8] sm:$0xff]  ;;  %v270_v39 = vpack.c.bf16 %v1306_v36, %v1303_v35  ;;  %v1321_v41 = vld [vmem:[%s1207_s7 + $0xb0] sm:$0xff]  ;;  %v1324_v42 = vld [vmem:[%s1207_s7 + $0xb8] sm:$0xff] }
  0x18   : > { %1119 = vmatpush3.bf16.msra.mxu1 %v1137_v21  ;;  %v271_v40 = vpack.c.bf16 %v1312_v38, %v1309_v37  ;;  %v1327_v43 = vld [vmem:[%s1207_s7 + $0xc0] sm:$0xff]  ;;  %v1330_v44 = vld [vmem:[%s1207_s7 + $0xc8] sm:$0xff]  ;;  %v272_v45 = vpack.c.bf16 %v1324_v42, %v1321_v41  ;;  %v1339_v47 = vld [vmem:[%s1207_s7 + $0xd0] sm:$0xff] }
  0x19   : > { %1062 = vmatpush3.bf16.msra.mxu0 %v1134_v3  ;;  %1112 = vmatprep.subr.bf16.mxu1 %v1138_v24  ;;  %v273_v46 = vpack.c.bf16 %v1330_v44, %v1327_v43  ;;  %v1342_v48 = vld [vmem:[%s1207_s7 + $0xd8] sm:$0xff]  ;;  %v1345_v49 = vld [vmem:[%s1207_s7 + $0xe0] sm:$0xff]  ;;  %v1348_v50 = vld [vmem:[%s1207_s7 + $0xe8] sm:$0xff] }
  0x1a   : > { %1063 = vmatprep.subr.bf16.mxu0 %v1135_v4  ;;  %v274_v51 = vpack.c.bf16 %v1342_v48, %v1339_v47  ;;  %v275_v52 = vpack.c.bf16 %v1348_v50, %v1345_v49  ;;  %v1357_v53 = vld [vmem:[%s1207_s7 + $0xf0] sm:$0xff]  ;;  %v1360_v54 = vld [vmem:[%s1207_s7 + $0xf8] sm:$0xff] }
  0x1b   : > { %v276_v55 = vpack.c.bf16 %v1360_v54, %v1357_v53 }
  0x1c   : > { %1032 = vmatmul.mubr.msk.bf16.gmra.mrb[4].mxu0 %vm300_vm0, %v264_v19  ;;  %1120 = vmatpush3.bf16.msra.mxu1 %v1138_v24 }
  0x1d   : > { %1035 = vmatprep.mubr.msk.bf16.mxu0 %vm300_vm0, %v265_v20  ;;  %1064 = vmatpush3.bf16.msra.mxu0 %v1135_v4 }
  0x1e   : > { %1065 = vmatprep.subr.bf16.mxu0 %v1136_v16  ;;  %1113 = vmatprep.subr.bf16.mxu1 %v1139_v56 }
  0x20   : > { %1121 = vmatpush3.bf16.msra.mxu1 %v1139_v56 }
  0x21   : > { %1066 = vmatpush3.bf16.msra.mxu0 %v1136_v16  ;;  %1114 = vmatprep.subr.bf16.mxu1 %v1140_v57 }
  0x22   : > { %1067 = vmatprep.subr.bf16.mxu0 %v1137_v21 }
  0x24   : > { %1036 = vmatmul.mubr.msk.bf16.gmra.mrb[8].mxu0 %vm300_vm0, %v266_v27  ;;  %1122 = vmatpush3.bf16.msra.mxu1 %v1140_v57 }
  0x25   : > { %1039 = vmatprep.mubr.msk.bf16.mxu0 %vm300_vm0, %v267_v28  ;;  %1068 = vmatpush3.bf16.msra.mxu0 %v1137_v21 }
  0x26   : > { %1069 = vmatprep.subr.bf16.mxu0 %v1138_v24 }
  0x29   : > { %1070 = vmatpush3.bf16.msra.mxu0 %v1138_v24 }
  0x2a   : > { %1071 = vmatprep.subr.bf16.mxu0 %v1139_v56 }
  0x2c   : > { %1040 = vmatmul.mubr.msk.bf16.gmra.mrb[12].mxu0 %vm300_vm0, %v268_v33 }
  0x2d   : > { %1043 = vmatprep.mubr.msk.bf16.mxu0 %vm300_vm0, %v269_v34  ;;  %1072 = vmatpush3.bf16.msra.mxu0 %v1139_v56 }
  0x2e   : > { %1073 = vmatprep.subr.bf16.mxu0 %v1140_v57 }
  0x31   : > { %1074 = vmatpush3.bf16.msra.mxu0 %v1140_v57 }
  0x34   : > { %1044 = vmatmul.mubr.msk.bf16.gmra.mrb[16].mxu0 %vm300_vm0, %v270_v39 }
  0x35   : > { %1047 = vmatprep.mubr.msk.bf16.mxu0 %vm300_vm0, %v271_v40 }
  0x3c   : > { %1048 = vmatmul.mubr.msk.bf16.gmra.mrb[20].mxu0 %vm300_vm0, %v272_v45 }
  0x3d   : > { %1051 = vmatprep.mubr.msk.bf16.mxu0 %vm300_vm0, %v273_v46 }
  0x44   : > { %1052 = vmatmul.mubr.msk.bf16.gmra.mrb[24].mxu0 %vm300_vm0, %v274_v51 }
  0x45   : > { %1055 = vmatprep.mubr.msk.bf16.mxu0 %vm300_vm0, %v275_v52 }
  0x4c   : > { %1056 = vmatmul.mubr.msk.bf16.gmra.mrb[28].mxu0 %vm300_vm0, %v276_v55 }
  0xe7   : > { %v1029_v59 = vpop.f32.mrb[0].mxu0 }
  0xe8   : > { %v392_v60 = vadd.f32 %v1029_v59, %v1374_v58  ;;  %v383_v61 = vpop.f32.mrb[1].mxu0 }
  0xe9   : > { %v384_v62 = vadd.f32 %v1374_v58, %v383_v61  ;;  %v1030_v63 = vpop.f32.mrb[2].mxu0 }
  0xea   : > { %v395_v0 = vadd.f32 %v1030_v63, %v1374_v58  ;;  %v386_v1 = vpop.f32.mrb[3].mxu0  ;;  %v512_v3 = vmax.f32 %v392_v60, 0.0 }
  0xeb   : > { %v387_v2 = vadd.f32 %v1374_v58, %v386_v1  ;;  %v510_v8 = vmax.f32 %v384_v62, 0.0 }
  0xec   : > { %v513_v4 = vmax.f32 %v395_v0, 0.0 }
  0xed   : > { %v511_v12 = vmax.f32 %v387_v2, 0.0 }
  0xee   : > { %v543_v13 = vpack.c.bf16 %v513_v4, %v512_v3 }
  0xef   : > { %v542_v16 = vpack.c.bf16 %v511_v12, %v510_v8  ;;  %v1033_v19 = vpop.f32.mrb[4].mxu0 }
  0xf0   : > { %v408_v20 = vadd.f32 %v1033_v19, %v1374_v58  ;;  %v399_v21 = vpop.f32.mrb[5].mxu0 }
  0xf1   : > { %v400_v24 = vadd.f32 %v1374_v58, %v399_v21  ;;  %v1034_v27 = vpop.f32.mrb[6].mxu0  ;;  %1075 = vmatprep.mubr.bf16.mxu0 %v542_v16 }
  0xf2   : > { %v411_v28 = vadd.f32 %v1034_v27, %v1374_v58  ;;  %v402_v33 = vpop.f32.mrb[7].mxu0  ;;  %1076 = vmatmul.mubr.bf16.vlgmr.msra.gmra.mrb[32].mxu0 %v543_v13  ;;  %v516_v39 = vmax.f32 %v408_v20, 0.0 }
  0xf3   : > { %v403_v34 = vadd.f32 %v1374_v58, %v402_v33  ;;  %v514_v45 = vmax.f32 %v400_v24, 0.0 }
  0xf4   : > { %v517_v40 = vmax.f32 %v411_v28, 0.0 }
  0xf5   : > { %v515_v46 = vmax.f32 %v403_v34, 0.0 }
  0xf6   : > { %v545_v51 = vpack.c.bf16 %v517_v40, %v516_v39 }
  0xf7   : > { %v1037_v52 = vpop.f32.mrb[8].mxu0  ;;  %v544_v55 = vpack.c.bf16 %v515_v46, %v514_v45 }
  0xf8   : > { %v424_v56 = vadd.f32 %v1037_v52, %v1374_v58  ;;  %v415_v57 = vpop.f32.mrb[9].mxu0 }
  0xf9   : > { %v416_v59 = vadd.f32 %v1374_v58, %v415_v57  ;;  %v1038_v60 = vpop.f32.mrb[10].mxu0  ;;  %1079 = vmatprep.mubr.bf16.mxu1 %v544_v55 }
  0xfa   : > { %v427_v61 = vadd.f32 %v1038_v60, %v1374_v58  ;;  %v418_v62 = vpop.f32.mrb[11].mxu0  ;;  %1080 = vmatmul.mubr.bf16.vlgmr.msra.gmra.mrb[0].mxu1 %v545_v51  ;;  %v520_v0 = vmax.f32 %v424_v56, 0.0 }
  0xfb   : > { %v419_v63 = vadd.f32 %v1374_v58, %v418_v62  ;;  %v518_v2 = vmax.f32 %v416_v59, 0.0 }
  0xfc   : > { %v521_v1 = vmax.f32 %v427_v61, 0.0 }
  0xfd   : > { %v519_v3 = vmax.f32 %v419_v63, 0.0 }
  0xfe   : > { %v547_v4 = vpack.c.bf16 %v521_v1, %v520_v0 }
  0xff   : > { %v546_v8 = vpack.c.bf16 %v519_v3, %v518_v2  ;;  %v1041_v12 = vpop.f32.mrb[12].mxu0 }
 0x100   : > { %v440_v13 = vadd.f32 %v1041_v12, %v1374_v58  ;;  %v431_v16 = vpop.f32.mrb[13].mxu0 }
 0x101   : > { %v432_v19 = vadd.f32 %v1374_v58, %v431_v16  ;;  %v1042_v20 = vpop.f32.mrb[14].mxu0  ;;  %1083 = vmatprep.mubr.bf16.mxu1 %v546_v8 }
 0x102   : > { %v443_v21 = vadd.f32 %v1042_v20, %v1374_v58  ;;  %v434_v24 = vpop.f32.mrb[15].mxu0  ;;  %1084 = vmatmul.mubr.bf16.gmra.mrb[4].mxu1 %v547_v4  ;;  %v524_v28 = vmax.f32 %v440_v13, 0.0 }
 0x103   : > { %v435_v27 = vadd.f32 %v1374_v58, %v434_v24  ;;  %v522_v34 = vmax.f32 %v432_v19, 0.0 }
 0x104   : > { %v525_v33 = vmax.f32 %v443_v21, 0.0 }
 0x105   : > { %v523_v39 = vmax.f32 %v435_v27, 0.0 }
 0x106   : > { %v549_v40 = vpack.c.bf16 %v525_v33, %v524_v28 }
 0x107   : > { %v548_v45 = vpack.c.bf16 %v523_v39, %v522_v34  ;;  %v1045_v46 = vpop.f32.mrb[16].mxu0 }
 0x108   : > { %v456_v51 = vadd.f32 %v1045_v46, %v1374_v58  ;;  %v447_v52 = vpop.f32.mrb[17].mxu0 }
 0x109   : > { %v448_v55 = vadd.f32 %v1374_v58, %v447_v52  ;;  %v1046_v56 = vpop.f32.mrb[18].mxu0  ;;  %1087 = vmatprep.mubr.bf16.mxu1 %v548_v45 }
 0x10a   : > { %v459_v57 = vadd.f32 %v1046_v56, %v1374_v58  ;;  %v450_v59 = vpop.f32.mrb[19].mxu0  ;;  %1088 = vmatmul.mubr.bf16.gmra.mrb[8].mxu1 %v549_v40  ;;  %v528_v61 = vmax.f32 %v456_v51, 0.0 }
 0x10b   : > { %v451_v60 = vadd.f32 %v1374_v58, %v450_v59  ;;  %v526_v63 = vmax.f32 %v448_v55, 0.0 }
 0x10c   : > { %v529_v62 = vmax.f32 %v459_v57, 0.0 }
 0x10d   : > { %v527_v0 = vmax.f32 %v451_v60, 0.0 }
 0x10e   : > { %v551_v1 = vpack.c.bf16 %v529_v62, %v528_v61 }
 0x10f   : > { %v550_v2 = vpack.c.bf16 %v527_v0, %v526_v63  ;;  %v1049_v3 = vpop.f32.mrb[20].mxu0 }
 0x110   : > { %v472_v4 = vadd.f32 %v1049_v3, %v1374_v58  ;;  %v463_v8 = vpop.f32.mrb[21].mxu0 }
 0x111   : > { %v464_v12 = vadd.f32 %v1374_v58, %v463_v8  ;;  %v1050_v13 = vpop.f32.mrb[22].mxu0  ;;  %1091 = vmatprep.mubr.bf16.mxu1 %v550_v2 }
 0x112   : > { %v475_v16 = vadd.f32 %v1050_v13, %v1374_v58  ;;  %v466_v19 = vpop.f32.mrb[23].mxu0  ;;  %1092 = vmatmul.mubr.bf16.gmra.mrb[12].mxu1 %v551_v1  ;;  %v532_v21 = vmax.f32 %v472_v4, 0.0 }
 0x113   : > { %v467_v20 = vadd.f32 %v1374_v58, %v466_v19  ;;  %v530_v27 = vmax.f32 %v464_v12, 0.0 }
 0x114   : > { %v533_v24 = vmax.f32 %v475_v16, 0.0 }
 0x115   : > { %v531_v28 = vmax.f32 %v467_v20, 0.0 }
 0x116   : > { %v553_v33 = vpack.c.bf16 %v533_v24, %v532_v21 }
 0x117   : > { %v552_v34 = vpack.c.bf16 %v531_v28, %v530_v27  ;;  %v1053_v39 = vpop.f32.mrb[24].mxu0  ;;  %v1411_v28 = vld [vmem:[%s1555_s4] ss:$0 sm:$0xff] }
 0x118   : > { %v488_v40 = vadd.f32 %v1053_v39, %v1374_v58  ;;  %v479_v45 = vpop.f32.mrb[25].mxu0 }
 0x119   : > { %v480_v46 = vadd.f32 %v1374_v58, %v479_v45  ;;  %v1054_v51 = vpop.f32.mrb[26].mxu0  ;;  %1095 = vmatprep.mubr.bf16.mxu1 %v552_v34 }
 0x11a   : > { %v491_v52 = vadd.f32 %v1054_v51, %v1374_v58  ;;  %v482_v55 = vpop.f32.mrb[27].mxu0  ;;  %1096 = vmatmul.mubr.bf16.gmra.mrb[16].mxu1 %v553_v33  ;;  %v536_v57 = vmax.f32 %v488_v40, 0.0 }
 0x11b   : > { %v483_v56 = vadd.f32 %v1374_v58, %v482_v55  ;;  %v534_v60 = vmax.f32 %v480_v46, 0.0 }
 0x11c   : > { %v537_v59 = vmax.f32 %v491_v52, 0.0 }
 0x11d   : > { %v535_v61 = vmax.f32 %v483_v56, 0.0 }
 0x11e   : > { %v555_v62 = vpack.c.bf16 %v537_v59, %v536_v57 }
 0x11f   : > { %v554_v63 = vpack.c.bf16 %v535_v61, %v534_v60  ;;  %v1057_v0 = vpop.f32.mrb[28].mxu0 }
 0x120   : > { %v504_v1 = vadd.f32 %v1057_v0, %v1374_v58  ;;  %v495_v2 = vpop.f32.mrb[29].mxu0 }
 0x121   : > { %v496_v3 = vadd.f32 %v1374_v58, %v495_v2  ;;  %v1058_v4 = vpop.f32.mrb[30].mxu0  ;;  %1099 = vmatprep.mubr.bf16.mxu1 %v554_v63 }
 0x122   : > { %v507_v8 = vadd.f32 %v1058_v4, %v1374_v58  ;;  %v498_v12 = vpop.f32.mrb[31].mxu0  ;;  %1100 = vmatmul.mubr.bf16.gmra.mrb[20].mxu1 %v555_v62  ;;  %v540_v16 = vmax.f32 %v504_v1, 0.0 }
 0x123   : > { %v499_v13 = vadd.f32 %v1374_v58, %v498_v12  ;;  %v538_v20 = vmax.f32 %v496_v3, 0.0 }
 0x124   : > { %v541_v19 = vmax.f32 %v507_v8, 0.0 }
 0x125   : > { %v539_v21 = vmax.f32 %v499_v13, 0.0 }
 0x126   : > { %v557_v24 = vpack.c.bf16 %v541_v19, %v540_v16 }
 0x127   : > { %v556_v27 = vpack.c.bf16 %v539_v21, %v538_v20 }
 0x129   : > { %1103 = vmatprep.mubr.bf16.mxu1 %v556_v27 }
 0x12a   : > { %1104 = vmatmul.mubr.bf16.gmra.mrb[24].mxu1 %v557_v24 }
 0x1c5   : > { %v1077_v33 = vpop.f32.mrb[32].mxu0 }
 0x1c6   : > { %v672_v34 = vadd.f32 %v1077_v33, %v1411_v28  ;;  %v663_v39 = vpop.f32.mrb[33].mxu0 }
 0x1c7   : > { %v664_v58 = vadd.f32 %v1411_v28, %v663_v39  ;;  %v1078_v40 = vpop.f32.mrb[34].mxu0 }
 0x1c8   : > { %v792_v45 = vmax.f32 %v672_v34, 0.0  ;;  %v675_v46 = vadd.f32 %v1078_v40, %v1411_v28  ;;  %v666_v51 = vpop.f32.mrb[35].mxu0 }
 0x1c9   : > { %v790_v52 = vmax.f32 %v664_v58, 0.0  ;;  %v667_v55 = vadd.f32 %v1411_v28, %v666_v51 }
 0x1ca   : > { %v824_v56 = vadd.f32 %v792_v45, %v1219_v7  ;;  %v793_v57 = vmax.f32 %v675_v46, 0.0 }
 0x1cb   : > { %v822_v59 = vadd.f32 %v790_v52, %v1213_v5  ;;  %v791_v60 = vmax.f32 %v667_v55, 0.0 }
 0x1cc   : > { %856 = vst.msk [vmem:[%s1421_s28 + $0x10] sm:$0xff] %vm300_vm0, %v824_v56  ;;  %v825_v61 = vadd.f32 %v793_v57, %v1224_v9 }
 0x1cd   : > { %854 = vst.msk [vmem:[%s1421_s28] sm:$0xff] %vm300_vm0, %v822_v59  ;;  %v823_v62 = vadd.f32 %v791_v60, %v1216_v6  ;;  %v1081_v63 = vpop.f32.mrb[0].mxu1 }
 0x1ce   : > { %857 = vst.msk [vmem:[%s1421_s28 + $0x18] sm:$0xff] %vm300_vm0, %v825_v61  ;;  %v688_v0 = vadd.f32 %v1081_v63, %v1411_v28  ;;  %v679_v7 = vpop.f32.mrb[1].mxu1 }
 0x1cf   : > { %855 = vst.msk [vmem:[%s1421_s28 + $0x8] sm:$0xff] %vm300_vm0, %v823_v62  ;;  %v680_v5 = vadd.f32 %v1411_v28, %v679_v7  ;;  %v1082_v1 = vpop.f32.mrb[2].mxu1 }
 0x1d0   : > { %v796_v2 = vmax.f32 %v688_v0, 0.0  ;;  %v691_v9 = vadd.f32 %v1082_v1, %v1411_v28  ;;  %v682_v3 = vpop.f32.mrb[3].mxu1 }
 0x1d1   : > { %v794_v6 = vmax.f32 %v680_v5, 0.0  ;;  %v683_v4 = vadd.f32 %v1411_v28, %v682_v3 }
 0x1d2   : > { %v828_v8 = vadd.f32 %v796_v2, %v1240_v14  ;;  %v797_v12 = vmax.f32 %v691_v9, 0.0 }
 0x1d3   : > { %v826_v13 = vadd.f32 %v794_v6, %v1227_v10  ;;  %v795_v16 = vmax.f32 %v683_v4, 0.0 }
 0x1d4   : > { %860 = vst.msk [vmem:[%s1421_s28 + $0x30] sm:$0xff] %vm300_vm0, %v828_v8  ;;  %v829_v19 = vadd.f32 %v797_v12, %v1243_v15 }
 0x1d5   : > { %858 = vst.msk [vmem:[%s1421_s28 + $0x20] sm:$0xff] %vm300_vm0, %v826_v13  ;;  %v827_v20 = vadd.f32 %v795_v16, %v1230_v11  ;;  %v1085_v21 = vpop.f32.mrb[4].mxu1 }
 0x1d6   : > { %861 = vst.msk [vmem:[%s1421_s28 + $0x38] sm:$0xff] %vm300_vm0, %v829_v19  ;;  %v704_v24 = vadd.f32 %v1085_v21, %v1411_v28  ;;  %v695_v14 = vpop.f32.mrb[5].mxu1 }
 0x1d7   : > { %859 = vst.msk [vmem:[%s1421_s28 + $0x28] sm:$0xff] %vm300_vm0, %v827_v20  ;;  %v696_v10 = vadd.f32 %v1411_v28, %v695_v14  ;;  %v1086_v27 = vpop.f32.mrb[6].mxu1 }
 0x1d8   : > { %v800_v33 = vmax.f32 %v704_v24, 0.0  ;;  %v707_v15 = vadd.f32 %v1086_v27, %v1411_v28  ;;  %v698_v34 = vpop.f32.mrb[7].mxu1 }
 0x1d9   : > { %v798_v11 = vmax.f32 %v696_v10, 0.0  ;;  %v699_v39 = vadd.f32 %v1411_v28, %v698_v34 }
 0x1da   : > { %v832_v58 = vadd.f32 %v800_v33, %v1264_v22  ;;  %v801_v40 = vmax.f32 %v707_v15, 0.0 }
 0x1db   : > { %v830_v45 = vadd.f32 %v798_v11, %v1249_v17  ;;  %v799_v46 = vmax.f32 %v699_v39, 0.0 }
 0x1dc   : > { %864 = vst.msk [vmem:[%s1421_s28 + $0x50] sm:$0xff] %vm300_vm0, %v832_v58  ;;  %v833_v51 = vadd.f32 %v801_v40, %v1267_v23 }
 0x1dd   : > { %862 = vst.msk [vmem:[%s1421_s28 + $0x40] sm:$0xff] %vm300_vm0, %v830_v45  ;;  %v831_v52 = vadd.f32 %v799_v46, %v1252_v18  ;;  %v1089_v55 = vpop.f32.mrb[8].mxu1 }
 0x1de   : > { %865 = vst.msk [vmem:[%s1421_s28 + $0x58] sm:$0xff] %vm300_vm0, %v833_v51  ;;  %v720_v56 = vadd.f32 %v1089_v55, %v1411_v28  ;;  %v711_v22 = vpop.f32.mrb[9].mxu1 }
 0x1df   : > { %863 = vst.msk [vmem:[%s1421_s28 + $0x48] sm:$0xff] %vm300_vm0, %v831_v52  ;;  %v712_v17 = vadd.f32 %v1411_v28, %v711_v22  ;;  %v1090_v57 = vpop.f32.mrb[10].mxu1 }
 0x1e0   : > { %v804_v59 = vmax.f32 %v720_v56, 0.0  ;;  %v723_v23 = vadd.f32 %v1090_v57, %v1411_v28  ;;  %v714_v60 = vpop.f32.mrb[11].mxu1 }
 0x1e1   : > { %v802_v18 = vmax.f32 %v712_v17, 0.0  ;;  %v715_v61 = vadd.f32 %v1411_v28, %v714_v60 }
 0x1e2   : > { %v836_v62 = vadd.f32 %v804_v59, %v1285_v29  ;;  %v805_v63 = vmax.f32 %v723_v23, 0.0 }
 0x1e3   : > { %v834_v0 = vadd.f32 %v802_v18, %v1273_v25  ;;  %v803_v7 = vmax.f32 %v715_v61, 0.0 }
 0x1e4   : > { %868 = vst.msk [vmem:[%s1421_s28 + $0x70] sm:$0xff] %vm300_vm0, %v836_v62  ;;  %v837_v5 = vadd.f32 %v805_v63, %v1288_v30 }
 0x1e5   : > { %866 = vst.msk [vmem:[%s1421_s28 + $0x60] sm:$0xff] %vm300_vm0, %v834_v0  ;;  %v835_v1 = vadd.f32 %v803_v7, %v1276_v26  ;;  %v1093_v2 = vpop.f32.mrb[12].mxu1 }
 0x1e6   : > { %869 = vst.msk [vmem:[%s1421_s28 + $0x78] sm:$0xff] %vm300_vm0, %v837_v5  ;;  %v736_v9 = vadd.f32 %v1093_v2, %v1411_v28  ;;  %v727_v29 = vpop.f32.mrb[13].mxu1 }
 0x1e7   : > { %867 = vst.msk [vmem:[%s1421_s28 + $0x68] sm:$0xff] %vm300_vm0, %v835_v1  ;;  %v728_v25 = vadd.f32 %v1411_v28, %v727_v29  ;;  %v1094_v3 = vpop.f32.mrb[14].mxu1 }
 0x1e8   : > { %v808_v6 = vmax.f32 %v736_v9, 0.0  ;;  %v739_v30 = vadd.f32 %v1094_v3, %v1411_v28  ;;  %v730_v4 = vpop.f32.mrb[15].mxu1 }
 0x1e9   : > { %v806_v26 = vmax.f32 %v728_v25, 0.0  ;;  %v731_v8 = vadd.f32 %v1411_v28, %v730_v4 }
 0x1ea   : > { %v840_v12 = vadd.f32 %v808_v6, %v1303_v35  ;;  %v809_v13 = vmax.f32 %v739_v30, 0.0 }
 0x1eb   : > { %v838_v16 = vadd.f32 %v806_v26, %v1291_v31  ;;  %v807_v19 = vmax.f32 %v731_v8, 0.0 }
 0x1ec   : > { %872 = vst.msk [vmem:[%s1421_s28 + $0x90] sm:$0xff] %vm300_vm0, %v840_v12  ;;  %v841_v20 = vadd.f32 %v809_v13, %v1306_v36 }
 0x1ed   : > { %870 = vst.msk [vmem:[%s1421_s28 + $0x80] sm:$0xff] %vm300_vm0, %v838_v16  ;;  %v839_v21 = vadd.f32 %v807_v19, %v1294_v32  ;;  %v1097_v24 = vpop.f32.mrb[16].mxu1 }
 0x1ee   : > { %873 = vst.msk [vmem:[%s1421_s28 + $0x98] sm:$0xff] %vm300_vm0, %v841_v20  ;;  %v752_v14 = vadd.f32 %v1097_v24, %v1411_v28  ;;  %v743_v35 = vpop.f32.mrb[17].mxu1 }
 0x1ef   : > { %871 = vst.msk [vmem:[%s1421_s28 + $0x88] sm:$0xff] %vm300_vm0, %v839_v21  ;;  %v744_v31 = vadd.f32 %v1411_v28, %v743_v35  ;;  %v1098_v10 = vpop.f32.mrb[18].mxu1 }
 0x1f0   : > { %v812_v27 = vmax.f32 %v752_v14, 0.0  ;;  %v755_v36 = vadd.f32 %v1098_v10, %v1411_v28  ;;  %v746_v33 = vpop.f32.mrb[19].mxu1 }
 0x1f1   : > { %v810_v32 = vmax.f32 %v744_v31, 0.0  ;;  %v747_v15 = vadd.f32 %v1411_v28, %v746_v33 }
 0x1f2   : > { %v844_v34 = vadd.f32 %v812_v27, %v1321_v41  ;;  %v813_v11 = vmax.f32 %v755_v36, 0.0 }
 0x1f3   : > { %v842_v39 = vadd.f32 %v810_v32, %v1309_v37  ;;  %v811_v58 = vmax.f32 %v747_v15, 0.0 }
 0x1f4   : > { %876 = vst.msk [vmem:[%s1421_s28 + $0xb0] sm:$0xff] %vm300_vm0, %v844_v34  ;;  %v845_v40 = vadd.f32 %v813_v11, %v1324_v42 }
 0x1f5   : > { %874 = vst.msk [vmem:[%s1421_s28 + $0xa0] sm:$0xff] %vm300_vm0, %v842_v39  ;;  %v843_v45 = vadd.f32 %v811_v58, %v1312_v38  ;;  %v1101_v46 = vpop.f32.mrb[20].mxu1 }
 0x1f6   : > { %877 = vst.msk [vmem:[%s1421_s28 + $0xb8] sm:$0xff] %vm300_vm0, %v845_v40  ;;  %v768_v51 = vadd.f32 %v1101_v46, %v1411_v28  ;;  %v759_v41 = vpop.f32.mrb[21].mxu1 }
 0x1f7   : > { %875 = vst.msk [vmem:[%s1421_s28 + $0xa8] sm:$0xff] %vm300_vm0, %v843_v45  ;;  %v760_v37 = vadd.f32 %v1411_v28, %v759_v41  ;;  %v1102_v52 = vpop.f32.mrb[22].mxu1 }
 0x1f8   : > { %v816_v55 = vmax.f32 %v768_v51, 0.0  ;;  %v771_v42 = vadd.f32 %v1102_v52, %v1411_v28  ;;  %v762_v56 = vpop.f32.mrb[23].mxu1 }
 0x1f9   : > { %v814_v38 = vmax.f32 %v760_v37, 0.0  ;;  %v763_v22 = vadd.f32 %v1411_v28, %v762_v56 }
 0x1fa   : > { %v848_v17 = vadd.f32 %v816_v55, %v1339_v47  ;;  %v817_v57 = vmax.f32 %v771_v42, 0.0 }
 0x1fb   : > { %v846_v59 = vadd.f32 %v814_v38, %v1327_v43  ;;  %v815_v23 = vmax.f32 %v763_v22, 0.0 }
 0x1fc   : > { %880 = vst.msk [vmem:[%s1421_s28 + $0xd0] sm:$0xff] %vm300_vm0, %v848_v17  ;;  %v849_v60 = vadd.f32 %v817_v57, %v1342_v48 }
 0x1fd   : > { %878 = vst.msk [vmem:[%s1421_s28 + $0xc0] sm:$0xff] %vm300_vm0, %v846_v59  ;;  %v847_v18 = vadd.f32 %v815_v23, %v1330_v44  ;;  %v1105_v61 = vpop.f32.mrb[24].mxu1 }
 0x1fe   : > { %881 = vst.msk [vmem:[%s1421_s28 + $0xd8] sm:$0xff] %vm300_vm0, %v849_v60  ;;  %v784_v62 = vadd.f32 %v1105_v61, %v1411_v28  ;;  %v775_v47 = vpop.f32.mrb[25].mxu1 }
 0x1ff   : > { %879 = vst.msk [vmem:[%s1421_s28 + $0xc8] sm:$0xff] %vm300_vm0, %v847_v18  ;;  %v776_v43 = vadd.f32 %v1411_v28, %v775_v47  ;;  %v1106_v63 = vpop.f32.mrb[26].mxu1 }
 0x200   : > { %v820_v48 = vmax.f32 %v784_v62, 0.0  ;;  %v787_v0 = vadd.f32 %v1106_v63, %v1411_v28  ;;  %v778_v7 = vpop.f32.mrb[27].mxu1 }
 0x201   : > { %v818_v44 = vmax.f32 %v776_v43, 0.0  ;;  %v779_v5 = vadd.f32 %v1411_v28, %v778_v7 }
 0x202   : > { %v852_v1 = vadd.f32 %v820_v48, %v1357_v53  ;;  %v821_v2 = vmax.f32 %v787_v0, 0.0 }
 0x203   : > { %v850_v9 = vadd.f32 %v818_v44, %v1345_v49  ;;  %v819_v29 = vmax.f32 %v779_v5, 0.0 }
 0x204   : > { %884 = vst.msk [vmem:[%s1421_s28 + $0xf0] sm:$0xff] %vm300_vm0, %v852_v1  ;;  %v853_v25 = vadd.f32 %v821_v2, %v1360_v54 }
 0x205   : > { %882 = vst.msk [vmem:[%s1421_s28 + $0xe0] sm:$0xff] %vm300_vm0, %v850_v9  ;;  %v851_v3 = vadd.f32 %v819_v29, %v1348_v50 }
 0x206   : > { %885 = vst.msk [vmem:[%s1421_s28 + $0xf8] sm:$0xff] %vm300_vm0, %v853_v25 }
 0x207   : > { %883 = vst.msk [vmem:[%s1421_s28 + $0xe8] sm:$0xff] %vm300_vm0, %v851_v3 }
 0x208 PF: > { %s15_s18 = sadd.s32 1, %s1147_s18  }
 0x209   : > { %p12_p4 = scmp.ge.s32.totalorder %s15_s18, 4  }
 0x20b   :  { %14 = sbr.rel (!%p12_p4) target bundleno = 1 (0x1), region = 70 }

</bundles_post_ra>
